<compile_context>
chip_gen: v7x
topology: tpu7x:2x2x1
jax: 0.10.0
libtpu: 0.0.40
codegen_flags: <defaults>
</compile_context>

<pallas_src>
import functools

import numpy as np
import jax
import jax.numpy as jnp
from jax import lax
from jax.experimental import pallas as pl
from jax.experimental.pallas import tpu as pltpu


def personalrank_kernel(roots_ref, consts_ref, T_ref, out_ref, *, max_depth):
    """roots_ref : VMEM int32[Bp, 1]  root index per batch row (-1 = padding row)
    consts_ref: SMEM f32[1]        (1 - alpha)
    T_ref     : VMEM f32[Np, Np]   alpha-prescaled row-normalized transition matrix
    out_ref   : VMEM f32[Bp, Np]   final rank block
    max_depth : static Python int  (loop fully unrolled)."""
    Bp, Np = out_ref.shape
    col = lax.broadcasted_iota(jnp.int32, (Bp, Np), 1)
    # onehot[b, j] = 1 if j == roots[b] else 0 ; padding rows (-1) stay all-zero.
    onehot = (col == roots_ref[...]).astype(jnp.float32)

    one_minus_alpha = consts_ref[0]
    base = one_minus_alpha * onehot          # restart term, hoisted out of loop

    rank = onehot                            # rank_0: 1 at root, 0 elsewhere
    for _ in range(max_depth):               # static unroll (LLO-visible)
        rank = jnp.dot(rank, T_ref[...],
                       preferred_element_type=jnp.float32) + base
    out_ref[...] = rank


@functools.lru_cache(maxsize=None)
def _build_personalrank_call(Bp, Np, max_depth):
    """Build (and cache) the compiled pallas_call for one problem shape."""
    assert Bp % 8 == 0 and Np % 128 == 0

    # Whole T resident in VMEM; explicit budget with headroom (well below the
    # 64 MiB physical VMEM of v7x, default-safe on v5e/v6e).
    vmem_need = Np * Np * 4 + 6 * Bp * Np * 4 + (2 << 20)
    vmem_limit = int(min(max(vmem_need, 32 << 20), 48 << 20))
    # TODO(synk): for graphs beyond Np ~ 4-6k, store T in bf16 and tile its
    # columns with a (depth, col) grid + double-buffered rank scratch instead
    # of one resident [Np, Np] f32 block.

    cost = pl.CostEstimate(
        flops=2 * max_depth * Bp * Np * Np,
        transcendentals=0,
        bytes_accessed=Np * Np * 4 + 2 * Bp * Np * 4,
    )

    kernel = functools.partial(personalrank_kernel, max_depth=int(max_depth))
    call = pl.pallas_call(
        kernel,
        out_shape=jax.ShapeDtypeStruct((Bp, Np), jnp.float32),
        in_specs=[
            pl.BlockSpec(memory_space=pltpu.MemorySpace.VMEM),   # roots [Bp,1]
            pl.BlockSpec(memory_space=pltpu.MemorySpace.SMEM),   # (1-alpha)
            pl.BlockSpec(memory_space=pltpu.MemorySpace.VMEM),   # T_scaled
        ],
        out_specs=pl.BlockSpec(memory_space=pltpu.MemorySpace.VMEM),
        compiler_params=pltpu.CompilerParams(vmem_limit_bytes=vmem_limit),
        cost_estimate=cost,
    )
    return jax.jit(call)


def personalrank_pallas(T_scaled, roots_idx, one_minus_alpha, max_depth):
    """T_scaled : [Np, Np] f32 (= alpha * row-normalized T), device array.
    roots_idx: [Bp] int32, Bp a multiple of 8, padded entries = -1.
    Returns [Bp, Np] f32 rank block."""
    Np = T_scaled.shape[0]
    Bp = roots_idx.shape[0]
    roots2d = jnp.asarray(roots_idx, dtype=jnp.int32).reshape(Bp, 1)
    consts = jnp.array([one_minus_alpha], dtype=jnp.float32)
    call = _build_personalrank_call(int(Bp), int(Np), int(max_depth))
    return call(roots2d, consts, T_scaled)


class RecommendationModelPallas:
    """JAX/Pallas re-implementation of the PyTorch RecommendationModel."""

    def __init__(self):
        # nn.Parameter(torch.tensor(0.8)) -- deterministic init, no checkpoint.
        self.alpha = 0.8
        # Device-resident prescaled transition matrix, cached per graph object
        # (assumes the graph dict is not mutated while the same object is reused).
        self._cache = {}

    def _get_transition(self, G):
        key = id(G)
        cached = self._cache.get(key)
        if cached is not None:
            return cached
        nodes = list(G.keys())
        idx = {node: i for i, node in enumerate(nodes)}
        n = len(nodes)
        Np = max(128, ((n + 127) // 128) * 128)
        # Dense row-normalized transition matrix with alpha folded in (glue).
        T = np.zeros((Np, Np), dtype=np.float32)
        for i_node, ri in G.items():
            deg = float(len(ri))
            for j_node, wij in ri.items():
                T[idx[i_node], idx[j_node]] = self.alpha * wij / (1.0 * deg)
        T_dev = jax.device_put(jnp.asarray(T))
        cached = (nodes, idx, n, Np, T_dev)
        self._cache[key] = cached
        return cached

    def rank_batch(self, G, roots, max_depth):
        """PersonalRank for several roots in one kernel call."""
        nodes, idx, n, _, T_dev = self._get_transition(G)
        B = len(roots)
        Bp = max(8, ((B + 7) // 8) * 8)          # pad batch to 8 sublanes
        roots_idx = np.full((Bp,), -1, dtype=np.int32)
        for b, r in enumerate(roots):
            roots_idx[b] = idx[r]
        out = personalrank_pallas(T_dev, roots_idx, 1.0 - self.alpha, max_depth)
        out = np.asarray(jax.block_until_ready(out))[:B, :n]
        return nodes, out

    def forward(self, G, root, max_depth, N, user_items):
        nodes, ranks = self.rank_batch(G, [root], max_depth)
        rank = {node: float(ranks[0, i]) for i, node in enumerate(nodes)}

        # Sort + top-N selection + string filtering (no Pallas equivalent for
        # string/dict ops -- kept in Python, same semantics as the PyTorch module).
        lst = sorted(rank.items(), key=lambda x: x[1], reverse=True)
        items = []
        for i in range(N):
            item = str(lst[i][0])
            if '/' in item and item not in user_items[root]:
                items.append(item)
        return items, rank


def personalrank_reference(G, root, max_depth, alpha):
    """Pure-Python reference identical to the PyTorch module's loop."""
    rank = {x: 0.0 for x in G.keys()}
    rank[root] = 1.0
    for _ in range(max_depth):
        tmp = {x: 0.0 for x in G.keys()}
        for i, ri in G.items():
            for j, wij in ri.items():
                tmp[j] += alpha * rank[i] * (wij / (1.0 * len(ri)))
        tmp[root] += 1 - alpha
        rank = tmp
    return rank


if __name__ == "__main__":
    # Deterministic small bipartite user-item graph from PRNGKey(0).
    key = jax.random.PRNGKey(0)
    n_users, n_items = 4, 8
    # np.array(...) makes a WRITABLE copy (jax buffers are read-only).
    adj = np.array(jax.random.bernoulli(key, 0.5, (n_users, n_items)))
    # Deterministic fix-up: every user and item gets at least one edge.
    for u in range(n_users):
        if not adj[u].any():
            adj[u, u % n_items] = True
    for it in range(n_items):
        if not adj[:, it].any():
            adj[it % n_users, it] = True

    users = [f"U{u}" for u in range(n_users)]
    item_names = [f"item/{i}" for i in range(n_items)]

    G = {}
    user_items = {}
    for u, uname in enumerate(users):
        G[uname] = {item_names[i]: 1 for i in range(n_items) if adj[u, i]}
        user_items[uname] = set(G[uname].keys())
    for i, iname in enumerate(item_names):
        G[iname] = {users[u]: 1 for u in range(n_users) if adj[u, i]}

    root, max_depth, N = "U0", 10, 5

    model = RecommendationModelPallas()

    # 1) Module-equivalent single-root forward.
    recs, rank = model.forward(G, root, max_depth, N, user_items)
    ref_rank = personalrank_reference(G, root, max_depth, alpha=0.8)
    max_err = max(abs(rank[k] - ref_rank[k]) for k in G)
    assert max_err < 1e-4, f"rank mismatch for {root}, max_err={max_err}"

    # 2) Batched kernel path: all users' random walks in one pallas_call
    #    (same compiled executable is reused thanks to the lru_cache).
    nodes, batch_ranks = model.rank_batch(G, users, max_depth)
    for b, uname in enumerate(users):
        ref = personalrank_reference(G, uname, max_depth, alpha=0.8)
        err = max(abs(float(batch_ranks[b, i]) - ref[node])
                  for i, node in enumerate(nodes))
        assert err < 1e-4, f"batched rank mismatch for {uname}, err={err}"

    # 3) Second single-root call to exercise the cached-executable fast path.
    recs2, rank2 = model.forward(G, users[1], max_depth, N, user_items)
    ref2 = personalrank_reference(G, users[1], max_depth, alpha=0.8)
    err2 = max(abs(rank2[k] - ref2[k]) for k in G)
    assert err2 < 1e-4, f"rank mismatch for {users[1]}, err={err2}"

    print("KERNEL_OK")
</pallas_src>

<mosaic_0001>
module attributes {stable_mosaic.version = 11 : i64} {
  func.func @personalrank_kernel(%arg0: memref<8x1xi32, #tpu.memory_space<vmem>>, %arg1: memref<1xf32, #tpu.memory_space<smem>>, %arg2: memref<128x128xf32, #tpu.memory_space<vmem>>, %arg3: memref<8x128xf32, #tpu.memory_space<vmem>>) attributes {dimension_semantics = [], scalar_prefetch = 0 : i64, scratch_operands = 0 : i64, tpu.core_type = #tpu.core_type<tc>} {
    %0 = tpu.iota {dimensions = array<i32: 1>} : vector<8x128xi32>
    %c0 = arith.constant 0 : index
    %c0_0 = arith.constant 0 : index
    %1 = vector.load %arg0[%c0, %c0_0] : memref<8x1xi32, #tpu.memory_space<vmem>>, vector<8x1xi32>
    %2 = vector.broadcast %1 : vector<8x1xi32> to vector<8x128xi32>
    %3 = arith.cmpi eq, %0, %2 : vector<8x128xi32>
    %4 = arith.extui %3 : vector<8x128xi1> to vector<8x128xi32>
    %5 = arith.sitofp %4 : vector<8x128xi32> to vector<8x128xf32>
    %c0_1 = arith.constant 0 : index
    %6 = memref.load %arg1[%c0_1] : memref<1xf32, #tpu.memory_space<smem>>
    %7 = vector.broadcast %6 : f32 to vector<8x128xf32>
    %8 = arith.mulf %7, %5 : vector<8x128xf32>
    %c0_2 = arith.constant 0 : index
    %c0_3 = arith.constant 0 : index
    %9 = vector.load %arg2[%c0_2, %c0_3] : memref<128x128xf32, #tpu.memory_space<vmem>>, vector<128x128xf32>
    %cst = arith.constant dense<0.000000e+00> : vector<8x128xf32>
    %10 = tpu.matmul %5, %9, %cst {dimension_numbers = #tpu.dot_dimension_numbers<[1], [0], [0], [1], [0, 0, 1, 1], [], []>} : vector<8x128xf32>, vector<128x128xf32>, vector<8x128xf32> -> vector<8x128xf32>
    %11 = arith.addf %10, %8 : vector<8x128xf32>
    %c0_4 = arith.constant 0 : index
    %c0_5 = arith.constant 0 : index
    %12 = vector.load %arg2[%c0_4, %c0_5] : memref<128x128xf32, #tpu.memory_space<vmem>>, vector<128x128xf32>
    %cst_6 = arith.constant dense<0.000000e+00> : vector<8x128xf32>
    %13 = tpu.matmul %11, %12, %cst_6 {dimension_numbers = #tpu.dot_dimension_numbers<[1], [0], [0], [1], [0, 0, 1, 1], [], []>} : vector<8x128xf32>, vector<128x128xf32>, vector<8x128xf32> -> vector<8x128xf32>
    %14 = arith.addf %13, %8 : vector<8x128xf32>
    %c0_7 = arith.constant 0 : index
    %c0_8 = arith.constant 0 : index
    %15 = vector.load %arg2[%c0_7, %c0_8] : memref<128x128xf32, #tpu.memory_space<vmem>>, vector<128x128xf32>
    %cst_9 = arith.constant dense<0.000000e+00> : vector<8x128xf32>
    %16 = tpu.matmul %14, %15, %cst_9 {dimension_numbers = #tpu.dot_dimension_numbers<[1], [0], [0], [1], [0, 0, 1, 1], [], []>} : vector<8x128xf32>, vector<128x128xf32>, vector<8x128xf32> -> vector<8x128xf32>
    %17 = arith.addf %16, %8 : vector<8x128xf32>
    %c0_10 = arith.constant 0 : index
    %c0_11 = arith.constant 0 : index
    %18 = vector.load %arg2[%c0_10, %c0_11] : memref<128x128xf32, #tpu.memory_space<vmem>>, vector<128x128xf32>
    %cst_12 = arith.constant dense<0.000000e+00> : vector<8x128xf32>
    %19 = tpu.matmul %17, %18, %cst_12 {dimension_numbers = #tpu.dot_dimension_numbers<[1], [0], [0], [1], [0, 0, 1, 1], [], []>} : vector<8x128xf32>, vector<128x128xf32>, vector<8x128xf32> -> vector<8x128xf32>
    %20 = arith.addf %19, %8 : vector<8x128xf32>
    %c0_13 = arith.constant 0 : index
    %c0_14 = arith.constant 0 : index
    %21 = vector.load %arg2[%c0_13, %c0_14] : memref<128x128xf32, #tpu.memory_space<vmem>>, vector<128x128xf32>
    %cst_15 = arith.constant dense<0.000000e+00> : vector<8x128xf32>
    %22 = tpu.matmul %20, %21, %cst_15 {dimension_numbers = #tpu.dot_dimension_numbers<[1], [0], [0], [1], [0, 0, 1, 1], [], []>} : vector<8x128xf32>, vector<128x128xf32>, vector<8x128xf32> -> vector<8x128xf32>
    %23 = arith.addf %22, %8 : vector<8x128xf32>
    %c0_16 = arith.constant 0 : index
    %c0_17 = arith.constant 0 : index
    %24 = vector.load %arg2[%c0_16, %c0_17] : memref<128x128xf32, #tpu.memory_space<vmem>>, vector<128x128xf32>
    %cst_18 = arith.constant dense<0.000000e+00> : vector<8x128xf32>
    %25 = tpu.matmul %23, %24, %cst_18 {dimension_numbers = #tpu.dot_dimension_numbers<[1], [0], [0], [1], [0, 0, 1, 1], [], []>} : vector<8x128xf32>, vector<128x128xf32>, vector<8x128xf32> -> vector<8x128xf32>
    %26 = arith.addf %25, %8 : vector<8x128xf32>
    %c0_19 = arith.constant 0 : index
    %c0_20 = arith.constant 0 : index
    %27 = vector.load %arg2[%c0_19, %c0_20] : memref<128x128xf32, #tpu.memory_space<vmem>>, vector<128x128xf32>
    %cst_21 = arith.constant dense<0.000000e+00> : vector<8x128xf32>
    %28 = tpu.matmul %26, %27, %cst_21 {dimension_numbers = #tpu.dot_dimension_numbers<[1], [0], [0], [1], [0, 0, 1, 1], [], []>} : vector<8x128xf32>, vector<128x128xf32>, vector<8x128xf32> -> vector<8x128xf32>
    %29 = arith.addf %28, %8 : vector<8x128xf32>
    %c0_22 = arith.constant 0 : index
    %c0_23 = arith.constant 0 : index
    %30 = vector.load %arg2[%c0_22, %c0_23] : memref<128x128xf32, #tpu.memory_space<vmem>>, vector<128x128xf32>
    %cst_24 = arith.constant dense<0.000000e+00> : vector<8x128xf32>
    %31 = tpu.matmul %29, %30, %cst_24 {dimension_numbers = #tpu.dot_dimension_numbers<[1], [0], [0], [1], [0, 0, 1, 1], [], []>} : vector<8x128xf32>, vector<128x128xf32>, vector<8x128xf32> -> vector<8x128xf32>
    %32 = arith.addf %31, %8 : vector<8x128xf32>
    %c0_25 = arith.constant 0 : index
    %c0_26 = arith.constant 0 : index
    %33 = vector.load %arg2[%c0_25, %c0_26] : memref<128x128xf32, #tpu.memory_space<vmem>>, vector<128x128xf32>
    %cst_27 = arith.constant dense<0.000000e+00> : vector<8x128xf32>
    %34 = tpu.matmul %32, %33, %cst_27 {dimension_numbers = #tpu.dot_dimension_numbers<[1], [0], [0], [1], [0, 0, 1, 1], [], []>} : vector<8x128xf32>, vector<128x128xf32>, vector<8x128xf32> -> vector<8x128xf32>
    %35 = arith.addf %34, %8 : vector<8x128xf32>
    %c0_28 = arith.constant 0 : index
    %c0_29 = arith.constant 0 : index
    %36 = vector.load %arg2[%c0_28, %c0_29] : memref<128x128xf32, #tpu.memory_space<vmem>>, vector<128x128xf32>
    %cst_30 = arith.constant dense<0.000000e+00> : vector<8x128xf32>
    %37 = tpu.matmul %35, %36, %cst_30 {dimension_numbers = #tpu.dot_dimension_numbers<[1], [0], [0], [1], [0, 0, 1, 1], [], []>} : vector<8x128xf32>, vector<128x128xf32>, vector<8x128xf32> -> vector<8x128xf32>
    %38 = arith.addf %37, %8 : vector<8x128xf32>
    %c0_31 = arith.constant 0 : index
    %c0_32 = arith.constant 0 : index
    %39 = vector.load %arg3[%c0_31, %c0_32] : memref<8x128xf32, #tpu.memory_space<vmem>>, vector<8x128xf32>
    tpu.vector_store %arg3[%c0_31, %c0_32], %38 {strides = array<i32>} : memref<8x128xf32, #tpu.memory_space<vmem>>, vector<8x128xf32>,
    return
  }
}

</mosaic_0001>

<bundles_post_ra>
// kernel: tpu_custom_call.1
= control target key start
LH: loop header
LB: loop body
LE: loop exit
PB: predicated region body
PF: predicated region fallthrough
CT: control target
= control target key end

     0   :  { %9 = vsyncpa [#allocation4], 0  ;;  %s1864_s0 = inlined_call_operand.vmem [shape: s32[8,1], index: 0, kind: input, shape index: {}]   ;;  %s1865_s1 = inlined_call_operand.<no memory space> [shape: f32[1], index: 1, kind: input, shape index: {}]   ;;  %s1866_s2 = inlined_call_operand.hbm [shape: f32[128,128], index: 2, kind: input, shape index: {}]   ;;  %s1867_s3 = inlined_call_operand.hbm [shape: f32[8,128], index: 3, kind: output, shape index: {}]  }
   0x1   :  { %10 = vsyncpa [#allocation5], 0  ;;  %s1594_s12 = smov [#allocation3]   ;;  %s1546_s16 = scalar_lea.hbm %s1866_s2, 2048 }
   0x2   :  { %s20_s13 = sshll.u32 %s1594_s12, 4  ;;  %p1547_p0 = scmp.ne.s32.totalorder %s1866_s2, %s1546_s16  ;;  %s21_s13 = int_to_ptr.vmem [resolvable:$true] %s20_s13 }
   0x3   :  { %p1550_p1 = scmp.lt.u32.totalorder %s1546_s16, %s1866_s2 }
   0x5   :  { %p1552_p2 = pnand %p1550_p1, %p1547_p0 }
   0x7   :  { %1555 = shalt.err (!%p1552_p2)
}
   0x8   :  { %s1556_s21 = scalar_lea.vmem %s21_s13, 2048  ;;  %p1561_p4 = scmp.lt.s32.totalorder %s21_s13, %s21_s13 }
   0x9   :  { %p1557_p3 = scmp.ne.s32.totalorder %s21_s13, %s1556_s21  ;;  %p1562_p5 = scmp.lt.s32.totalorder %s1556_s21, %s1556_s21 }
   0xb   :  { %p1563_p6 = por %p1562_p5, %p1561_p4 }
   0xd   :  { %p1564_p7 = pnand %p1563_p6, %p1557_p3 }
   0xf   :  { %1567 = shalt.err (!%p1564_p7)
}
  0x10   :  { %s1595_s22 = smov 128   ;;  %s1596_s23 = smov 8  }
  0x11   :  { %26 = dma.hbm_to_vmem [thread:$0]  %s1866_s2, 2048, %s21_s13, [#allocation4], %s1595_s22, %s1595_s22, %s1596_s23  }
  0x12   :  { %1590 = dma.done.wait [#allocation4], 2048  }
  0x13   :  { %1591 = vsyncadd [#allocation4], 4294965248  ;;  %v1597_v0 = vmov 0   ;;  %v1598_v1 = vmov 0.0|0.0   ;;  %v32_v2 = vld [vmem:[%s1864_s0] sm:$0xff]  ;;  %v43_v4 = vld [vmem:[#allocation3 + $0x8] sm:$0xff]  ;;  %v30_v28 = vlaneseq  ;;  %v40_v32 = vstv %s1865_s1 }
  0x14   :  { %1545 = vset.pattern.permute.xlu0 %v1597_v0  ;;  %1296 = vmatprep.subr.bf16.mxu0 %v1598_v1  ;;  %v42_v3 = vld [vmem:[#allocation3] sm:$0xff]  ;;  %v44_v6 = vld [vmem:[#allocation3 + $0x10] sm:$0xff]  ;;  %v45_v7 = vld [vmem:[#allocation3 + $0x18] sm:$0xff]  ;;  %vm1599_vm0 = vmmov 0   ;;  %v1600_v8 = vmov 0.0   ;;  %v1601_v31 = vmov 1.0  }
  0x15   :  { %1320 = vmatprep.subr.bf16.mxu1 %v1598_v1  ;;  %34 = vperm.xlu0 %1545, %v32_v2   ;;  %v1640_v5 = vpack.c.bf16 %v43_v4, %v42_v3  ;;  %v1647_v9 = vpack.c.bf16 %v45_v7, %v44_v6  ;;  %v46_v10 = vld [vmem:[#allocation3 + $0x20] sm:$0xff]  ;;  %v47_v11 = vld [vmem:[#allocation3 + $0x28] sm:$0xff]  ;;  %v48_v13 = vld [vmem:[#allocation3 + $0x30] sm:$0xff]  ;;  %v31_v29 = vand.u32 127, %v30_v28  ;;  %s1602_s1 = smov [#allocation6]  }
  0x16   :  { %978 = vmatprep.mubr.msk.f32.mxu0 %vm1599_vm0, %v1600_v8  ;;  %1013 = vmatprep.mubr.msk.f32.mxu1 %vm1599_vm0, %v1600_v8  ;;  %v1653_v12 = vpack.c.bf16 %v47_v11, %v46_v10  ;;  %v49_v14 = vld [vmem:[#allocation3 + $0x38] sm:$0xff]  ;;  %v50_v16 = vld [vmem:[#allocation3 + $0x40] sm:$0xff]  ;;  %v51_v17 = vld [vmem:[#allocation3 + $0x48] sm:$0xff]  ;;  %s765_s28 = sshll.u32 %s1602_s1, 4  ;;  %s766_s28 = int_to_ptr.vmem [resolvable:$true] %s765_s28 }
  0x17   :  { %1298 = vmatpush3.bf16.msra.mxu0 %v1640_v5  ;;  %1322 = vmatpush3.bf16.msra.mxu1 %v1640_v5  ;;  %v1659_v15 = vpack.c.bf16 %v49_v14, %v48_v13  ;;  %v1665_v18 = vpack.c.bf16 %v51_v17, %v50_v16  ;;  %v52_v19 = vld [vmem:[#allocation3 + $0x50] sm:$0xff]  ;;  %v53_v20 = vld [vmem:[#allocation3 + $0x58] sm:$0xff]  ;;  %v54_v22 = vld [vmem:[#allocation3 + $0x60] sm:$0xff]  ;;  %s1568_s29 = scalar_lea.vmem %s766_s28, 128  ;;  %p1573_p9 = scmp.lt.s32.totalorder %s766_s28, %s766_s28 }
  0x18   :  { %1299 = vmatprep.subr.bf16.mxu0 %v1598_v1  ;;  %1323 = vmatprep.subr.bf16.mxu1 %v1598_v1  ;;  %v1671_v21 = vpack.c.bf16 %v53_v20, %v52_v19  ;;  %v55_v23 = vld [vmem:[#allocation3 + $0x68] sm:$0xff]  ;;  %v56_v25 = vld [vmem:[#allocation3 + $0x70] sm:$0xff]  ;;  %v57_v26 = vld [vmem:[#allocation3 + $0x78] sm:$0xff]  ;;  %p1569_p8 = scmp.ne.s32.totalorder %s766_s28, %s1568_s29  ;;  %p1574_p10 = scmp.lt.s32.totalorder %s1568_s29, %s1568_s29 }
  0x19   :  { %v1677_v24 = vpack.c.bf16 %v55_v23, %v54_v22  ;;  %v1683_v27 = vpack.c.bf16 %v57_v26, %v56_v25 }
  0x1a   :  { %p1575_p11 = por %p1574_p10, %p1573_p9 }
  0x1b   :  { %1301 = vmatpush3.bf16.msra.mxu0 %v1647_v9  ;;  %1325 = vmatpush3.bf16.msra.mxu1 %v1647_v9 }
  0x1c   :  { %1302 = vmatprep.subr.bf16.mxu0 %v1598_v1  ;;  %1326 = vmatprep.subr.bf16.mxu1 %v1598_v1  ;;  %p1576_p12 = pnand %p1575_p11, %p1569_p8 }
  0x1f   :  { %1304 = vmatpush3.bf16.msra.mxu0 %v1653_v12  ;;  %1328 = vmatpush3.bf16.msra.mxu1 %v1653_v12 }
  0x20   :  { %1305 = vmatprep.subr.bf16.mxu0 %v1598_v1  ;;  %1329 = vmatprep.subr.bf16.mxu1 %v1598_v1 }
  0x23   :  { %1307 = vmatpush3.bf16.msra.mxu0 %v1659_v15  ;;  %1331 = vmatpush3.bf16.msra.mxu1 %v1659_v15 }
  0x24   :  { %1308 = vmatprep.subr.bf16.mxu0 %v1598_v1  ;;  %1332 = vmatprep.subr.bf16.mxu1 %v1598_v1 }
  0x27   :  { %1310 = vmatpush3.bf16.msra.mxu0 %v1665_v18  ;;  %1334 = vmatpush3.bf16.msra.mxu1 %v1665_v18 }
  0x28   :  { %1311 = vmatprep.subr.bf16.mxu0 %v1598_v1  ;;  %1335 = vmatprep.subr.bf16.mxu1 %v1598_v1 }
  0x2b   :  { %1313 = vmatpush3.bf16.msra.mxu0 %v1671_v21  ;;  %1337 = vmatpush3.bf16.msra.mxu1 %v1671_v21 }
  0x2c   :  { %1314 = vmatprep.subr.bf16.mxu0 %v1598_v1  ;;  %1338 = vmatprep.subr.bf16.mxu1 %v1598_v1 }
  0x2f   :  { %1316 = vmatpush3.bf16.msra.mxu0 %v1677_v24  ;;  %1340 = vmatpush3.bf16.msra.mxu1 %v1677_v24 }
  0x30   :  { %1317 = vmatprep.subr.bf16.mxu0 %v1598_v1  ;;  %1341 = vmatprep.subr.bf16.mxu1 %v1598_v1 }
  0x33   :  { %1319 = vmatpush3.bf16.msra.mxu0 %v1683_v27  ;;  %1343 = vmatpush3.bf16.msra.mxu1 %v1683_v27 }
  0x34   :  { %1344 = vmatprep.subr.bf16.mxu0 %v1598_v1  ;;  %1368 = vmatprep.subr.bf16.mxu1 %v1598_v1 }
  0x94   :  { %v35_v30 = vpop.permute.xlu0 %34 }
  0x95   :  { %vm36_vm1 = vcmp.eq.s32.totalorder %v31_v29, %v35_v30 }
  0x96   :  { %979 = vmatmul.mubr.msk.f32.vlgmr.msra.gmra.mrb[0].mxu0 %vm36_vm1, %v1601_v31  ;;  %v774_v33 = vsel %vm36_vm1, 1.0, %v1600_v8 }
  0x97   :  { %1346 = vmatpush3.bf16.msra.mxu0 %v1640_v5  ;;  %1048 = vmatprep.mubr.msk.f32.mxu0 %vm1599_vm0, %v1600_v8  ;;  %v1716_v34 = vmul.f32 %v774_v33, %v40_v32 }
  0x98   :  { %1347 = vmatprep.subr.bf16.mxu0 %v1598_v1 }
  0x9b   :  { %1349 = vmatpush3.bf16.msra.mxu0 %v1647_v9 }
  0x9c   :  { %1350 = vmatprep.subr.bf16.mxu0 %v1598_v1 }
  0x9f   :  { %1352 = vmatpush3.bf16.msra.mxu0 %v1653_v12 }
  0xa0   :  { %1353 = vmatprep.subr.bf16.mxu0 %v1598_v1 }
  0xa3   :  { %1355 = vmatpush3.bf16.msra.mxu0 %v1659_v15 }
  0xa4   :  { %1356 = vmatprep.subr.bf16.mxu0 %v1598_v1 }
  0xa7   :  { %1358 = vmatpush3.bf16.msra.mxu0 %v1665_v18 }
  0xa8   :  { %1359 = vmatprep.subr.bf16.mxu0 %v1598_v1 }
  0xab   :  { %1361 = vmatpush3.bf16.msra.mxu0 %v1671_v21 }
  0xac   :  { %1362 = vmatprep.subr.bf16.mxu0 %v1598_v1 }
  0xaf   :  { %1364 = vmatpush3.bf16.msra.mxu0 %v1677_v24 }
  0xb0   :  { %1365 = vmatprep.subr.bf16.mxu0 %v1598_v1 }
  0xb3   :  { %1367 = vmatpush3.bf16.msra.mxu0 %v1683_v27 }
  0xb4   :  { %1392 = vmatprep.subr.bf16.mxu0 %v1598_v1 }
 0x169   :  { %v124_v35 = vpop.f32.mrb[0].mxu0 }
 0x16a   :  { %v125_v36 = vadd.f32 %v124_v35, %v1716_v34  ;;  %v980_v37 = vpop.f32.mrb[1].mxu0 }
 0x16c   :  { %1014 = vmatmul.mubr.f32.vlgmr.msra.gmra.mrb[0].mxu1 %v125_v36 }
 0x16d   :  { %1370 = vmatpush3.bf16.msra.mxu1 %v1640_v5  ;;  %1083 = vmatprep.mubr.msk.f32.mxu1 %vm1599_vm0, %v1600_v8 }
 0x16e   :  { %1371 = vmatprep.subr.bf16.mxu1 %v1598_v1 }
 0x171   :  { %1373 = vmatpush3.bf16.msra.mxu1 %v1647_v9 }
 0x172   :  { %1374 = vmatprep.subr.bf16.mxu1 %v1598_v1 }
 0x175   :  { %1376 = vmatpush3.bf16.msra.mxu1 %v1653_v12 }
 0x176   :  { %1377 = vmatprep.subr.bf16.mxu1 %v1598_v1 }
 0x179   :  { %1379 = vmatpush3.bf16.msra.mxu1 %v1659_v15 }
 0x17a   :  { %1380 = vmatprep.subr.bf16.mxu1 %v1598_v1 }
 0x17d   :  { %1382 = vmatpush3.bf16.msra.mxu1 %v1665_v18 }
 0x17e   :  { %1383 = vmatprep.subr.bf16.mxu1 %v1598_v1 }
 0x181   :  { %1385 = vmatpush3.bf16.msra.mxu1 %v1671_v21 }
 0x182   :  { %1386 = vmatprep.subr.bf16.mxu1 %v1598_v1 }
 0x185   :  { %1388 = vmatpush3.bf16.msra.mxu1 %v1677_v24 }
 0x186   :  { %1389 = vmatprep.subr.bf16.mxu1 %v1598_v1 }
 0x189   :  { %1391 = vmatpush3.bf16.msra.mxu1 %v1683_v27 }
 0x18a   :  { %1416 = vmatprep.subr.bf16.mxu1 %v1598_v1 }
 0x23f   :  { %v194_v38 = vpop.f32.mrb[0].mxu1 }
 0x240   :  { %v195_v39 = vadd.f32 %v194_v38, %v1716_v34  ;;  %v1015_v40 = vpop.f32.mrb[1].mxu1 }
 0x242   :  { %1049 = vmatmul.mubr.f32.vlgmr.msra.gmra.mrb[2].mxu0 %v195_v39 }
 0x243   :  { %1394 = vmatpush3.bf16.msra.mxu0 %v1640_v5  ;;  %1118 = vmatprep.mubr.msk.f32.mxu0 %vm1599_vm0, %v1600_v8 }
 0x244   :  { %1395 = vmatprep.subr.bf16.mxu0 %v1598_v1 }
 0x247   :  { %1397 = vmatpush3.bf16.msra.mxu0 %v1647_v9 }
 0x248   :  { %1398 = vmatprep.subr.bf16.mxu0 %v1598_v1 }
 0x24b   :  { %1400 = vmatpush3.bf16.msra.mxu0 %v1653_v12 }
 0x24c   :  { %1401 = vmatprep.subr.bf16.mxu0 %v1598_v1 }
 0x24f   :  { %1403 = vmatpush3.bf16.msra.mxu0 %v1659_v15 }
 0x250   :  { %1404 = vmatprep.subr.bf16.mxu0 %v1598_v1 }
 0x253   :  { %1406 = vmatpush3.bf16.msra.mxu0 %v1665_v18 }
 0x254   :  { %1407 = vmatprep.subr.bf16.mxu0 %v1598_v1 }
 0x257   :  { %1409 = vmatpush3.bf16.msra.mxu0 %v1671_v21 }
 0x258   :  { %1410 = vmatprep.subr.bf16.mxu0 %v1598_v1 }
 0x25b   :  { %1412 = vmatpush3.bf16.msra.mxu0 %v1677_v24 }
 0x25c   :  { %1413 = vmatprep.subr.bf16.mxu0 %v1598_v1 }
 0x25f   :  { %1415 = vmatpush3.bf16.msra.mxu0 %v1683_v27 }
 0x260   :  { %1440 = vmatprep.subr.bf16.mxu0 %v1598_v1 }
 0x315   :  { %v264_v41 = vpop.f32.mrb[2].mxu0 }
 0x316   :  { %v265_v42 = vadd.f32 %v264_v41, %v1716_v34  ;;  %v1050_v43 = vpop.f32.mrb[3].mxu0 }
 0x318   :  { %1084 = vmatmul.mubr.f32.vlgmr.msra.gmra.mrb[2].mxu1 %v265_v42 }
 0x319   :  { %1418 = vmatpush3.bf16.msra.mxu1 %v1640_v5  ;;  %1153 = vmatprep.mubr.msk.f32.mxu1 %vm1599_vm0, %v1600_v8 }
 0x31a   :  { %1419 = vmatprep.subr.bf16.mxu1 %v1598_v1 }
 0x31d   :  { %1421 = vmatpush3.bf16.msra.mxu1 %v1647_v9 }
 0x31e   :  { %1422 = vmatprep.subr.bf16.mxu1 %v1598_v1 }
 0x321   :  { %1424 = vmatpush3.bf16.msra.mxu1 %v1653_v12 }
 0x322   :  { %1425 = vmatprep.subr.bf16.mxu1 %v1598_v1 }
 0x325   :  { %1427 = vmatpush3.bf16.msra.mxu1 %v1659_v15 }
 0x326   :  { %1428 = vmatprep.subr.bf16.mxu1 %v1598_v1 }
 0x329   :  { %1430 = vmatpush3.bf16.msra.mxu1 %v1665_v18 }
 0x32a   :  { %1431 = vmatprep.subr.bf16.mxu1 %v1598_v1 }
 0x32d   :  { %1433 = vmatpush3.bf16.msra.mxu1 %v1671_v21 }
 0x32e   :  { %1434 = vmatprep.subr.bf16.mxu1 %v1598_v1 }
 0x331   :  { %1436 = vmatpush3.bf16.msra.mxu1 %v1677_v24 }
 0x332   :  { %1437 = vmatprep.subr.bf16.mxu1 %v1598_v1 }
 0x335   :  { %1439 = vmatpush3.bf16.msra.mxu1 %v1683_v27 }
 0x336   :  { %1464 = vmatprep.subr.bf16.mxu1 %v1598_v1 }
 0x3eb   :  { %v334_v44 = vpop.f32.mrb[2].mxu1 }
 0x3ec   :  { %v335_v45 = vadd.f32 %v334_v44, %v1716_v34  ;;  %v1085_v46 = vpop.f32.mrb[3].mxu1 }
 0x3ee   :  { %1119 = vmatmul.mubr.f32.vlgmr.msra.gmra.mrb[4].mxu0 %v335_v45 }
 0x3ef   :  { %1442 = vmatpush3.bf16.msra.mxu0 %v1640_v5  ;;  %1188 = vmatprep.mubr.msk.f32.mxu0 %vm1599_vm0, %v1600_v8 }
 0x3f0   :  { %1443 = vmatprep.subr.bf16.mxu0 %v1598_v1 }
 0x3f3   :  { %1445 = vmatpush3.bf16.msra.mxu0 %v1647_v9 }
 0x3f4   :  { %1446 = vmatprep.subr.bf16.mxu0 %v1598_v1 }
 0x3f7   :  { %1448 = vmatpush3.bf16.msra.mxu0 %v1653_v12 }
 0x3f8   :  { %1449 = vmatprep.subr.bf16.mxu0 %v1598_v1 }
 0x3fb   :  { %1451 = vmatpush3.bf16.msra.mxu0 %v1659_v15 }
 0x3fc   :  { %1452 = vmatprep.subr.bf16.mxu0 %v1598_v1 }
 0x3ff   :  { %1454 = vmatpush3.bf16.msra.mxu0 %v1665_v18 }
 0x400   :  { %1455 = vmatprep.subr.bf16.mxu0 %v1598_v1 }
 0x403   :  { %1457 = vmatpush3.bf16.msra.mxu0 %v1671_v21 }
 0x404   :  { %1458 = vmatprep.subr.bf16.mxu0 %v1598_v1 }
 0x407   :  { %1460 = vmatpush3.bf16.msra.mxu0 %v1677_v24 }
 0x408   :  { %1461 = vmatprep.subr.bf16.mxu0 %v1598_v1 }
 0x40b   :  { %1463 = vmatpush3.bf16.msra.mxu0 %v1683_v27 }
 0x40c   :  { %1488 = vmatprep.subr.bf16.mxu0 %v1598_v1 }
 0x4c1   :  { %v404_v47 = vpop.f32.mrb[4].mxu0 }
 0x4c2   :  { %v405_v48 = vadd.f32 %v404_v47, %v1716_v34  ;;  %v1120_v49 = vpop.f32.mrb[5].mxu0 }
 0x4c4   :  { %1154 = vmatmul.mubr.f32.vlgmr.msra.gmra.mrb[4].mxu1 %v405_v48 }
 0x4c5   :  { %1466 = vmatpush3.bf16.msra.mxu1 %v1640_v5  ;;  %1223 = vmatprep.mubr.msk.f32.mxu1 %vm1599_vm0, %v1600_v8 }
 0x4c6   :  { %1467 = vmatprep.subr.bf16.mxu1 %v1598_v1 }
 0x4c9   :  { %1469 = vmatpush3.bf16.msra.mxu1 %v1647_v9 }
 0x4ca   :  { %1470 = vmatprep.subr.bf16.mxu1 %v1598_v1 }
 0x4cd   :  { %1472 = vmatpush3.bf16.msra.mxu1 %v1653_v12 }
 0x4ce   :  { %1473 = vmatprep.subr.bf16.mxu1 %v1598_v1 }
 0x4d1   :  { %1475 = vmatpush3.bf16.msra.mxu1 %v1659_v15 }
 0x4d2   :  { %1476 = vmatprep.subr.bf16.mxu1 %v1598_v1 }
 0x4d5   :  { %1478 = vmatpush3.bf16.msra.mxu1 %v1665_v18 }
 0x4d6   :  { %1479 = vmatprep.subr.bf16.mxu1 %v1598_v1 }
 0x4d9   :  { %1481 = vmatpush3.bf16.msra.mxu1 %v1671_v21 }
 0x4da   :  { %1482 = vmatprep.subr.bf16.mxu1 %v1598_v1 }
 0x4dd   :  { %1484 = vmatpush3.bf16.msra.mxu1 %v1677_v24 }
 0x4de   :  { %1485 = vmatprep.subr.bf16.mxu1 %v1598_v1 }
 0x4e1   :  { %1487 = vmatpush3.bf16.msra.mxu1 %v1683_v27 }
 0x4e2   :  { %1512 = vmatprep.subr.bf16.mxu1 %v1598_v1 }
 0x597   :  { %v474_v50 = vpop.f32.mrb[4].mxu1 }
 0x598   :  { %v475_v51 = vadd.f32 %v474_v50, %v1716_v34  ;;  %v1155_v52 = vpop.f32.mrb[5].mxu1 }
 0x59a   :  { %1189 = vmatmul.mubr.f32.vlgmr.msra.gmra.mrb[6].mxu0 %v475_v51 }
 0x59b   :  { %1490 = vmatpush3.bf16.msra.mxu0 %v1640_v5  ;;  %1258 = vmatprep.mubr.msk.f32.mxu0 %vm1599_vm0, %v1600_v8 }
 0x59c   :  { %1491 = vmatprep.subr.bf16.mxu0 %v1598_v1 }
 0x59f   :  { %1493 = vmatpush3.bf16.msra.mxu0 %v1647_v9 }
 0x5a0   :  { %1494 = vmatprep.subr.bf16.mxu0 %v1598_v1 }
 0x5a3   :  { %1496 = vmatpush3.bf16.msra.mxu0 %v1653_v12 }
 0x5a4   :  { %1497 = vmatprep.subr.bf16.mxu0 %v1598_v1 }
 0x5a7   :  { %1499 = vmatpush3.bf16.msra.mxu0 %v1659_v15 }
 0x5a8   :  { %1500 = vmatprep.subr.bf16.mxu0 %v1598_v1 }
 0x5ab   :  { %1502 = vmatpush3.bf16.msra.mxu0 %v1665_v18 }
 0x5ac   :  { %1503 = vmatprep.subr.bf16.mxu0 %v1598_v1 }
 0x5af   :  { %1505 = vmatpush3.bf16.msra.mxu0 %v1671_v21 }
 0x5b0   :  { %1506 = vmatprep.subr.bf16.mxu0 %v1598_v1 }
 0x5b3   :  { %1508 = vmatpush3.bf16.msra.mxu0 %v1677_v24 }
 0x5b4   :  { %1509 = vmatprep.subr.bf16.mxu0 %v1598_v1 }
 0x5b7   :  { %1511 = vmatpush3.bf16.msra.mxu0 %v1683_v27 }
 0x66d   :  { %v544_v53 = vpop.f32.mrb[6].mxu0 }
 0x66e   :  { %v545_v54 = vadd.f32 %v544_v53, %v1716_v34  ;;  %v1190_v55 = vpop.f32.mrb[7].mxu0 }
 0x670   :  { %1224 = vmatmul.mubr.f32.vlgmr.msra.gmra.mrb[6].mxu1 %v545_v54 }
 0x671   :  { %1514 = vmatpush3.bf16.msra.mxu1 %v1640_v5  ;;  %1293 = vmatprep.mubr.msk.f32.mxu1 %vm1599_vm0, %v1600_v8 }
 0x672   :  { %1515 = vmatprep.subr.bf16.mxu1 %v1598_v1 }
 0x675   :  { %1517 = vmatpush3.bf16.msra.mxu1 %v1647_v9 }
 0x676   :  { %1518 = vmatprep.subr.bf16.mxu1 %v1598_v1 }
 0x679   :  { %1520 = vmatpush3.bf16.msra.mxu1 %v1653_v12 }
 0x67a   :  { %1521 = vmatprep.subr.bf16.mxu1 %v1598_v1 }
 0x67d   :  { %1523 = vmatpush3.bf16.msra.mxu1 %v1659_v15 }
 0x67e   :  { %1524 = vmatprep.subr.bf16.mxu1 %v1598_v1 }
 0x681   :  { %1526 = vmatpush3.bf16.msra.mxu1 %v1665_v18 }
 0x682   :  { %1527 = vmatprep.subr.bf16.mxu1 %v1598_v1 }
 0x685   :  { %1529 = vmatpush3.bf16.msra.mxu1 %v1671_v21 }
 0x686   :  { %1530 = vmatprep.subr.bf16.mxu1 %v1598_v1 }
 0x689   :  { %1532 = vmatpush3.bf16.msra.mxu1 %v1677_v24 }
 0x68a   :  { %1533 = vmatprep.subr.bf16.mxu1 %v1598_v1 }
 0x68d   :  { %1535 = vmatpush3.bf16.msra.mxu1 %v1683_v27 }
 0x743   :  { %v614_v56 = vpop.f32.mrb[6].mxu1 }
 0x744   :  { %v615_v57 = vadd.f32 %v614_v56, %v1716_v34  ;;  %v1225_v58 = vpop.f32.mrb[7].mxu1 }
 0x746   :  { %1259 = vmatmul.mubr.f32.vlgmr.msra.gmra.mrb[8].mxu0 %v615_v57 }
 0x819   :  { %v684_v59 = vpop.f32.mrb[8].mxu0 }
 0x81a   :  { %v685_v60 = vadd.f32 %v684_v59, %v1716_v34  ;;  %v1260_v61 = vpop.f32.mrb[9].mxu0 }
 0x81c   :  { %1294 = vmatmul.mubr.f32.vlgmr.msra.gmra.mrb[8].mxu1 %v685_v60 }
 0x8ef   :  { %v754_v62 = vpop.f32.mrb[8].mxu1 }
 0x8f0   :  { %v755_v63 = vadd.f32 %v754_v62, %v1716_v34  ;;  %v1295_v0 = vpop.f32.mrb[9].mxu1 }
 0x8f2   :  { %758 = vst [vmem:[#allocation6] sm:$0xff] %v755_v63 }
 0x8f3   :  { %1579 = shalt.err (!%p1576_p12)
}
 0x8f4   :  { %s1580_s5 = scalar_lea.hbm %s1867_s3, 128 }
 0x8f5   :  { %p1581_p13 = scmp.ne.s32.totalorder %s1867_s3, %s1580_s5  ;;  %p1584_p0 = scmp.lt.u32.totalorder %s1580_s5, %s1867_s3 }
 0x8f7   :  { %p1586_p1 = pnand %p1584_p0, %p1581_p13 }
 0x8f9   :  { %1589 = shalt.err (!%p1586_p1)
}
 0x8fa   :  { %768 = dma.vmem_to_hbm [thread:$0]  %s766_s28, 128, %s1867_s3, [#allocation5]  }
 0x8fb   :  { %1592 = dma.done.wait [#allocation5], 128  }
 0x8fc   :  { %1593 = vsyncadd [#allocation5], 4294967168 }
 0x8fd   :  { %772 = vsyncpa [#allocation4], 1 }
 0x8fe   :  { %773 = vsyncpa [#allocation5], 1 }

</bundles_post_ra>
